<compile_context>
chip_gen: v7x
topology: tpu7x:2x2x1
jax: 0.10.0
libtpu: 0.0.40
codegen_flags: <defaults>
</compile_context>

<pallas_src>
import functools

import jax
import jax.numpy as jnp
from jax.experimental import pallas as pl
from jax.experimental.pallas import tpu as pltpu

EXPANSION_FACTOR = 4   # transformer_config['expansion_factor']
LN_EPS = 1e-5          # torch.nn.LayerNorm default


def _layer_norm(y, gamma, beta):
    mu = jnp.mean(y, axis=-1, keepdims=True)
    var = jnp.mean((y - mu) ** 2, axis=-1, keepdims=True)
    return (y - mu) * jax.lax.rsqrt(var + LN_EPS) * gamma + beta


def encoder_block_kernel(x_ref, wqkv_ref, g1_ref, be1_ref, w1_ref, b1_ref,
                         w2_ref, b2_ref, g2_ref, be2_ref, o_ref, attn_res,
                         *, n_heads, d_head, seq):
    H, S, dh = n_heads, seq, d_head

    x_att = x_ref[...].astype(jnp.float32)            # (H, S, dh), one batch elem

    # --- fused Q/K/V projection: ONE bf16 matmul over all heads of this batch ---
    xf = x_att.reshape(H * S, dh).astype(jnp.bfloat16)
    qkv = jnp.dot(xf, wqkv_ref[...],
                  preferred_element_type=jnp.float32)   # (H*S, 3*dh) f32 acc
    qkv = qkv.reshape(H, S, 3 * dh)
    q = qkv[:, :, 0:dh]
    k = qkv[:, :, dh:2 * dh]
    v = qkv[:, :, 2 * dh:3 * dh]

    # --- batched attention at head width (no mask in the module's forward) ---
    scale = 1.0 / jnp.sqrt(jnp.float32(dh))
    s = jnp.einsum('hqd,hkd->hqk', q.astype(jnp.bfloat16), k.astype(jnp.bfloat16),
                   preferred_element_type=jnp.float32) * scale      # (H, S, S)
    s = s - jnp.max(s, axis=-1, keepdims=True)
    p = jnp.exp(s)
    p = p / jnp.sum(p, axis=-1, keepdims=True)          # exact softmax, f32

    ctx = jnp.einsum('hqk,hkd->hqd', p.astype(jnp.bfloat16), v.astype(jnp.bfloat16),
                     preferred_element_type=jnp.float32)            # (H, S, dh)

    # residual in head-major space (column permutation of token-major op + x)
    res = ctx + x_att                                   # (H, S, dh)

    # head concat: H static lane-offset stores into a (S, D) VMEM scratch
    for h in range(H):
        attn_res[:, h * dh:(h + 1) * dh] = res[h]

    # --- residual + LayerNorm 1 (already summed above) ---
    h1 = _layer_norm(attn_res[...], g1_ref[...], be1_ref[...])      # (S, D) f32

    # --- feed-forward: Linear -> ReLU -> Linear (bf16 operands, f32 acc) ---
    ff = jnp.dot(h1.astype(jnp.bfloat16), w1_ref[...],
                 preferred_element_type=jnp.float32) + b1_ref[...]
    ff = jnp.maximum(ff, 0.0)
    ff2 = jnp.dot(ff.astype(jnp.bfloat16), w2_ref[...],
                  preferred_element_type=jnp.float32) + b2_ref[...]

    # --- residual + LayerNorm 2 ---
    h2 = _layer_norm(ff2 + h1, g2_ref[...], be2_ref[...])
    o_ref[...] = h2.astype(o_ref.dtype)


def encoder_block(x, params, n_heads):
    B, S, D = x.shape
    dh = D // n_heads
    (wk, wq, wv, g1, be1, w1, b1, w2, b2, g2, be2) = params
    D_ff = w1.shape[1]
    H = n_heads

    # ---- wrapper-side layout plumbing (plain XLA, one-time) ----
    # head-major view: x_att[b*H + h, s, d] = x[b, s, h*dh + d]
    x_att = x.reshape(B, S, H, dh).transpose(0, 2, 1, 3).reshape(B * H, S, dh)
    # fused projection weight (dh, 3*dh); MXU operands pre-cast to bf16
    wqkv = jnp.concatenate([wq, wk, wv], axis=1).astype(jnp.bfloat16)
    w1_b = w1.astype(jnp.bfloat16)
    w2_b = w2.astype(jnp.bfloat16)

    args = (x_att, wqkv, g1, be1, w1_b, b1, w2_b, b2, g2, be2)

    def const_spec(shape):
        # weights / LN params: same block every grid step -> stays VMEM-resident
        return pl.BlockSpec(shape, lambda b, _n=len(shape): (0,) * _n)

    in_specs = [pl.BlockSpec((H, S, dh), lambda b: (b, 0, 0))]      # one batch elem
    in_specs += [const_spec(a.shape) for a in args[1:]]

    kernel = functools.partial(encoder_block_kernel, n_heads=H, d_head=dh, seq=S)

    flops = int(2 * (B * H * S * dh * 3 * dh        # fused qkv projection
                     + 2 * B * H * S * S * dh       # scores + context
                     + B * S * D * D_ff             # ffn linear 1
                     + B * S * D_ff * D))           # ffn linear 2
    transcendentals = int(B * H * S * S + 2 * B * S)
    bytes_accessed = int(sum(a.size * a.dtype.itemsize for a in args)
                         + B * S * D * x.dtype.itemsize)

    out = pl.pallas_call(
        kernel,
        out_shape=jax.ShapeDtypeStruct((B * S, D), x.dtype),
        grid_spec=pltpu.PrefetchScalarGridSpec(
            num_scalar_prefetch=0,
            grid=(B,),                                   # one batch elem per step
            in_specs=in_specs,
            out_specs=pl.BlockSpec((S, D), lambda b: (b, 0)),
            scratch_shapes=[pltpu.VMEM((S, D), jnp.float32)],
        ),
        compiler_params=pltpu.CompilerParams(
            dimension_semantics=("parallel",)),          # megacore split on v7x
        cost_estimate=pl.CostEstimate(flops=flops,
                                      transcendentals=transcendentals,
                                      bytes_accessed=bytes_accessed),
    )(*args)
    return out.reshape(B, S, D)


def reference(x, params, n_heads):
    (wk, wq, wv, g1, be1, w1, b1, w2, b2, g2, be2) = params
    B, S, D = x.shape
    dh = D // n_heads
    xh = x.reshape(B, S, n_heads, dh)
    k = jnp.einsum('bshd,de->bshe', xh, wk)
    q = jnp.einsum('bshd,de->bshe', xh, wq)
    v = jnp.einsum('bshd,de->bshe', xh, wv)
    scores = jnp.einsum('bqhd,bkhd->bhqk', q, k) / jnp.sqrt(jnp.float32(dh))
    p = jax.nn.softmax(scores, axis=-1)
    out = jnp.einsum('bhqk,bkhd->bqhd', p, v).reshape(B, S, D)

    def ln(y, g, be):
        mu = y.mean(-1, keepdims=True)
        var = ((y - mu) ** 2).mean(-1, keepdims=True)
        return (y - mu) / jnp.sqrt(var + LN_EPS) * g + be

    h1 = ln(out + x, g1, be1)
    ff = jnp.maximum(h1 @ w1 + b1, 0.0) @ w2 + b2
    return ln(ff + h1, g2, be2)


if __name__ == "__main__":
    B, S, D = 2, 8, 32
    N_HEADS = 4
    D_HEAD = D // N_HEADS
    D_FF = D * EXPANSION_FACTOR

    key = jax.random.PRNGKey(0)
    ks = jax.random.split(key, 8)
    x = jax.random.normal(ks[0], (B, S, D), jnp.float32)

    # Linear weights stored as (in, out); LayerNorm defaults: gamma=1, beta=0.
    wk = jax.random.normal(ks[1], (D_HEAD, D_HEAD), jnp.float32) * 0.2
    wq = jax.random.normal(ks[2], (D_HEAD, D_HEAD), jnp.float32) * 0.2
    wv = jax.random.normal(ks[3], (D_HEAD, D_HEAD), jnp.float32) * 0.2
    g1 = jnp.ones((1, D), jnp.float32)
    be1 = jnp.zeros((1, D), jnp.float32)
    w1 = jax.random.normal(ks[4], (D, D_FF), jnp.float32) * 0.1
    b1 = jax.random.normal(ks[5], (1, D_FF), jnp.float32) * 0.05
    w2 = jax.random.normal(ks[6], (D_FF, D), jnp.float32) * 0.1
    b2 = jax.random.normal(ks[7], (1, D), jnp.float32) * 0.05
    g2 = jnp.ones((1, D), jnp.float32)
    be2 = jnp.zeros((1, D), jnp.float32)

    params = (wk, wq, wv, g1, be1, w1, b1, w2, b2, g2, be2)

    out = encoder_block(x, params, N_HEADS)
    out = jax.block_until_ready(out)

    ref = jax.block_until_ready(reference(x, params, N_HEADS))
    assert out.shape == (B, S, D)
    # tolerance leaves headroom for bf16 MXU operands (f32 reference)
    assert jnp.allclose(out, ref, atol=3e-2, rtol=3e-2), "mismatch vs pure-JAX reference"
    print("KERNEL_OK")
</pallas_src>

<mosaic_0001>
module attributes {stable_mosaic.version = 11 : i64} {
  func.func @encoder_block_kernel(%arg0: i32, %arg1: memref<4x8x8xf32, #tpu.memory_space<vmem>>, %arg2: memref<8x24xbf16, #tpu.memory_space<vmem>>, %arg3: memref<1x32xf32, #tpu.memory_space<vmem>>, %arg4: memref<1x32xf32, #tpu.memory_space<vmem>>, %arg5: memref<32x128xbf16, #tpu.memory_space<vmem>>, %arg6: memref<1x128xf32, #tpu.memory_space<vmem>>, %arg7: memref<128x32xbf16, #tpu.memory_space<vmem>>, %arg8: memref<1x32xf32, #tpu.memory_space<vmem>>, %arg9: memref<1x32xf32, #tpu.memory_space<vmem>>, %arg10: memref<1x32xf32, #tpu.memory_space<vmem>>, %arg11: memref<8x32xf32, #tpu.memory_space<vmem>>, %arg12: memref<8x32xf32, #tpu.memory_space<vmem>>) attributes {dimension_semantics = [#tpu.dimension_semantics<parallel>], iteration_bounds = array<i64: 2>, scalar_prefetch = 0 : i64, scratch_operands = 1 : i64, tpu.core_type = #tpu.core_type<tc>, window_params = [{transform_indices = @transform_0, window_bounds = array<i64: 4, 8, 8>}, {pipeline_mode = #tpu.pipeline_mode<synchronous>, transform_indices = @transform_1, window_bounds = array<i64: 8, 24>}, {pipeline_mode = #tpu.pipeline_mode<synchronous>, transform_indices = @transform_2, window_bounds = array<i64: 1, 32>}, {pipeline_mode = #tpu.pipeline_mode<synchronous>, transform_indices = @transform_3, window_bounds = array<i64: 1, 32>}, {pipeline_mode = #tpu.pipeline_mode<synchronous>, transform_indices = @transform_4, window_bounds = array<i64: 32, 128>}, {pipeline_mode = #tpu.pipeline_mode<synchronous>, transform_indices = @transform_5, window_bounds = array<i64: 1, 128>}, {pipeline_mode = #tpu.pipeline_mode<synchronous>, transform_indices = @transform_6, window_bounds = array<i64: 128, 32>}, {pipeline_mode = #tpu.pipeline_mode<synchronous>, transform_indices = @transform_7, window_bounds = array<i64: 1, 32>}, {pipeline_mode = #tpu.pipeline_mode<synchronous>, transform_indices = @transform_8, window_bounds = array<i64: 1, 32>}, {pipeline_mode = #tpu.pipeline_mode<synchronous>, transform_indices = @transform_9, window_bounds = array<i64: 1, 32>}, {transform_indices = @transform_10, window_bounds = array<i64: 8, 32>}]} {
    %c0 = arith.constant 0 : index
    %c0_0 = arith.constant 0 : index
    %c0_1 = arith.constant 0 : index
    %0 = vector.load %arg1[%c0, %c0_0, %c0_1] : memref<4x8x8xf32, #tpu.memory_space<vmem>>, vector<4x8x8xf32>
    %1 = vector.shape_cast %0 : vector<4x8x8xf32> to vector<32x8xf32>
    %2 = arith.truncf %1 : vector<32x8xf32> to vector<32x8xbf16>
    %c0_2 = arith.constant 0 : index
    %c0_3 = arith.constant 0 : index
    %3 = vector.load %arg2[%c0_2, %c0_3] : memref<8x24xbf16, #tpu.memory_space<vmem>>, vector<8x24xbf16>
    %cst = arith.constant dense<0.000000e+00> : vector<32x24xf32>
    %4 = tpu.matmul %2, %3, %cst {dimension_numbers = #tpu.dot_dimension_numbers<[1], [0], [0], [1], [0, 0, 1, 1], [], []>} : vector<32x8xbf16>, vector<8x24xbf16>, vector<32x24xf32> -> vector<32x24xf32>
    %5 = vector.shape_cast %4 : vector<32x24xf32> to vector<4x8x24xf32>
    %6 = vector.extract_strided_slice %5 {offsets = [0, 0, 0], sizes = [4, 8, 8], strides = [1, 1, 1]} : vector<4x8x24xf32> to vector<4x8x8xf32>
    %7 = vector.extract_strided_slice %5 {offsets = [0, 0, 8], sizes = [4, 8, 8], strides = [1, 1, 1]} : vector<4x8x24xf32> to vector<4x8x8xf32>
    %8 = vector.extract_strided_slice %5 {offsets = [0, 0, 16], sizes = [4, 8, 8], strides = [1, 1, 1]} : vector<4x8x24xf32> to vector<4x8x8xf32>
    %cst_4 = arith.constant 8.000000e+00 : f32
    %9 = math.sqrt %cst_4 : f32
    %cst_5 = arith.constant 1.000000e+00 : f32
    %10 = arith.divf %cst_5, %9 : f32
    %11 = arith.truncf %6 : vector<4x8x8xf32> to vector<4x8x8xbf16>
    %12 = arith.truncf %7 : vector<4x8x8xf32> to vector<4x8x8xbf16>
    "tpu.trace_start"() <{level = 10 : i32, message = "hqd,hkd->hqk"}> : () -> ()
    %cst_6 = arith.constant dense<0.000000e+00> : vector<4x8x8xf32>
    %13 = tpu.matmul %11, %12, %cst_6 {dimension_numbers = #tpu.dot_dimension_numbers<[2], [2], [1], [1], [0, 0, 0, 1, 1, 1], [0], [0]>} : vector<4x8x8xbf16>, vector<4x8x8xbf16>, vector<4x8x8xf32> -> vector<4x8x8xf32>
    "tpu.trace_stop"() : () -> ()
    %14 = vector.broadcast %10 : f32 to vector<4x8x8xf32>
    %15 = arith.mulf %13, %14 : vector<4x8x8xf32>
    %cst_7 = arith.constant dense<0xFF800000> : vector<4x8xf32>
    %16 = vector.multi_reduction <maximumf>, %15, %cst_7 [2] : vector<4x8x8xf32> to vector<4x8xf32>
    %17 = vector.shape_cast %16 : vector<4x8xf32> to vector<4x8x1xf32>
    %18 = vector.broadcast %17 : vector<4x8x1xf32> to vector<4x8x8xf32>
    %19 = arith.subf %15, %18 : vector<4x8x8xf32>
    %20 = math.exp %19 : vector<4x8x8xf32>
    %cst_8 = arith.constant dense<0.000000e+00> : vector<4x8xf32>
    %21 = vector.multi_reduction <add>, %20, %cst_8 [2] : vector<4x8x8xf32> to vector<4x8xf32>
    %22 = vector.shape_cast %21 : vector<4x8xf32> to vector<4x8x1xf32>
    %23 = vector.broadcast %22 : vector<4x8x1xf32> to vector<4x8x8xf32>
    %24 = arith.divf %20, %23 : vector<4x8x8xf32>
    %25 = arith.truncf %24 : vector<4x8x8xf32> to vector<4x8x8xbf16>
    %26 = arith.truncf %8 : vector<4x8x8xf32> to vector<4x8x8xbf16>
    "tpu.trace_start"() <{level = 10 : i32, message = "hqk,hkd->hqd"}> : () -> ()
    %cst_9 = arith.constant dense<0.000000e+00> : vector<4x8x8xf32>
    %27 = tpu.matmul %25, %26, %cst_9 {dimension_numbers = #tpu.dot_dimension_numbers<[2], [1], [1], [2], [0, 0, 0, 1, 1, 2], [0], [0]>} : vector<4x8x8xbf16>, vector<4x8x8xbf16>, vector<4x8x8xf32> -> vector<4x8x8xf32>
    "tpu.trace_stop"() : () -> ()
    %28 = arith.addf %27, %0 : vector<4x8x8xf32>
    %29 = vector.extract_strided_slice %28 {offsets = [0, 0, 0], sizes = [1, 8, 8], strides = [1, 1, 1]} : vector<4x8x8xf32> to vector<1x8x8xf32>
    %30 = vector.shape_cast %29 : vector<1x8x8xf32> to vector<8x8xf32>
    %c0_10 = arith.constant 0 : index
    %c0_11 = arith.constant 0 : index
    %31 = vector.load %arg12[%c0_10, %c0_11] : memref<8x32xf32, #tpu.memory_space<vmem>>, vector<8x8xf32>
    tpu.vector_store %arg12[%c0_10, %c0_11], %30 {strides = array<i32>} : memref<8x32xf32, #tpu.memory_space<vmem>>, vector<8x8xf32>,
    %32 = vector.extract_strided_slice %28 {offsets = [1, 0, 0], sizes = [1, 8, 8], strides = [1, 1, 1]} : vector<4x8x8xf32> to vector<1x8x8xf32>
    %33 = vector.shape_cast %32 : vector<1x8x8xf32> to vector<8x8xf32>
    %c0_12 = arith.constant 0 : index
    %c8 = arith.constant 8 : index
    %34 = vector.load %arg12[%c0_12, %c8] : memref<8x32xf32, #tpu.memory_space<vmem>>, vector<8x8xf32>
    tpu.vector_store %arg12[%c0_12, %c8], %33 {strides = array<i32>} : memref<8x32xf32, #tpu.memory_space<vmem>>, vector<8x8xf32>,
    %35 = vector.extract_strided_slice %28 {offsets = [2, 0, 0], sizes = [1, 8, 8], strides = [1, 1, 1]} : vector<4x8x8xf32> to vector<1x8x8xf32>
    %36 = vector.shape_cast %35 : vector<1x8x8xf32> to vector<8x8xf32>
    %c0_13 = arith.constant 0 : index
    %c16 = arith.constant 16 : index
    %37 = vector.load %arg12[%c0_13, %c16] : memref<8x32xf32, #tpu.memory_space<vmem>>, vector<8x8xf32>
    tpu.vector_store %arg12[%c0_13, %c16], %36 {strides = array<i32>} : memref<8x32xf32, #tpu.memory_space<vmem>>, vector<8x8xf32>,
    %38 = vector.extract_strided_slice %28 {offsets = [3, 0, 0], sizes = [1, 8, 8], strides = [1, 1, 1]} : vector<4x8x8xf32> to vector<1x8x8xf32>
    %39 = vector.shape_cast %38 : vector<1x8x8xf32> to vector<8x8xf32>
    %c0_14 = arith.constant 0 : index
    %c24 = arith.constant 24 : index
    %40 = vector.load %arg12[%c0_14, %c24] : memref<8x32xf32, #tpu.memory_space<vmem>>, vector<8x8xf32>
    tpu.vector_store %arg12[%c0_14, %c24], %39 {strides = array<i32>} : memref<8x32xf32, #tpu.memory_space<vmem>>, vector<8x8xf32>,
    %c0_15 = arith.constant 0 : index
    %c0_16 = arith.constant 0 : index
    %41 = vector.load %arg12[%c0_15, %c0_16] : memref<8x32xf32, #tpu.memory_space<vmem>>, vector<8x32xf32>
    %c0_17 = arith.constant 0 : index
    %c0_18 = arith.constant 0 : index
    %42 = vector.load %arg3[%c0_17, %c0_18] : memref<1x32xf32, #tpu.memory_space<vmem>>, vector<1x32xf32>
    %c0_19 = arith.constant 0 : index
    %c0_20 = arith.constant 0 : index
    %43 = vector.load %arg4[%c0_19, %c0_20] : memref<1x32xf32, #tpu.memory_space<vmem>>, vector<1x32xf32>
    %cst_21 = arith.constant dense<0.000000e+00> : vector<8xf32>
    %44 = vector.multi_reduction <add>, %41, %cst_21 [1] : vector<8x32xf32> to vector<8xf32>
    %45 = vector.shape_cast %44 : vector<8xf32> to vector<8x1xf32>
    %cst_22 = arith.constant 3.200000e+01 : f32
    %46 = vector.broadcast %cst_22 : f32 to vector<8x1xf32>
    %47 = arith.divf %45, %46 : vector<8x1xf32>
    %48 = vector.broadcast %47 : vector<8x1xf32> to vector<8x32xf32>
    %49 = arith.subf %41, %48 : vector<8x32xf32>
    %50 = arith.mulf %49, %49 : vector<8x32xf32>
    %cst_23 = arith.constant dense<0.000000e+00> : vector<8xf32>
    %51 = vector.multi_reduction <add>, %50, %cst_23 [1] : vector<8x32xf32> to vector<8xf32>
    %52 = vector.shape_cast %51 : vector<8xf32> to vector<8x1xf32>
    %cst_24 = arith.constant 3.200000e+01 : f32
    %53 = vector.broadcast %cst_24 : f32 to vector<8x1xf32>
    %54 = arith.divf %52, %53 : vector<8x1xf32>
    %55 = vector.broadcast %47 : vector<8x1xf32> to vector<8x32xf32>
    %56 = arith.subf %41, %55 : vector<8x32xf32>
    %cst_25 = arith.constant 9.99999974E-6 : f32
    %57 = vector.broadcast %cst_25 : f32 to vector<8x1xf32>
    %58 = arith.addf %54, %57 : vector<8x1xf32>
    %59 = math.rsqrt %58 : vector<8x1xf32>
    %60 = vector.broadcast %59 : vector<8x1xf32> to vector<8x32xf32>
    %61 = arith.mulf %56, %60 : vector<8x32xf32>
    %62 = vector.broadcast %42 : vector<1x32xf32> to vector<8x32xf32>
    %63 = arith.mulf %61, %62 : vector<8x32xf32>
    %64 = vector.broadcast %43 : vector<1x32xf32> to vector<8x32xf32>
    %65 = arith.addf %63, %64 : vector<8x32xf32>
    %66 = arith.truncf %65 : vector<8x32xf32> to vector<8x32xbf16>
    %c0_26 = arith.constant 0 : index
    %c0_27 = arith.constant 0 : index
    %67 = vector.load %arg5[%c0_26, %c0_27] : memref<32x128xbf16, #tpu.memory_space<vmem>>, vector<32x128xbf16>
    %cst_28 = arith.constant dense<0.000000e+00> : vector<8x128xf32>
    %68 = tpu.matmul %66, %67, %cst_28 {dimension_numbers = #tpu.dot_dimension_numbers<[1], [0], [0], [1], [0, 0, 1, 1], [], []>} : vector<8x32xbf16>, vector<32x128xbf16>, vector<8x128xf32> -> vector<8x128xf32>
    %c0_29 = arith.constant 0 : index
    %c0_30 = arith.constant 0 : index
    %69 = vector.load %arg6[%c0_29, %c0_30] : memref<1x128xf32, #tpu.memory_space<vmem>>, vector<1x128xf32>
    %70 = vector.broadcast %69 : vector<1x128xf32> to vector<8x128xf32>
    %71 = arith.addf %68, %70 : vector<8x128xf32>
    %cst_31 = arith.constant 0.000000e+00 : f32
    %72 = vector.broadcast %cst_31 : f32 to vector<8x128xf32>
    %73 = arith.maximumf %71, %72 : vector<8x128xf32>
    %74 = arith.truncf %73 : vector<8x128xf32> to vector<8x128xbf16>
    %c0_32 = arith.constant 0 : index
    %c0_33 = arith.constant 0 : index
    %75 = vector.load %arg7[%c0_32, %c0_33] : memref<128x32xbf16, #tpu.memory_space<vmem>>, vector<128x32xbf16>
    %cst_34 = arith.constant dense<0.000000e+00> : vector<8x32xf32>
    %76 = tpu.matmul %74, %75, %cst_34 {dimension_numbers = #tpu.dot_dimension_numbers<[1], [0], [0], [1], [0, 0, 1, 1], [], []>} : vector<8x128xbf16>, vector<128x32xbf16>, vector<8x32xf32> -> vector<8x32xf32>
    %c0_35 = arith.constant 0 : index
    %c0_36 = arith.constant 0 : index
    %77 = vector.load %arg8[%c0_35, %c0_36] : memref<1x32xf32, #tpu.memory_space<vmem>>, vector<1x32xf32>
    %78 = vector.broadcast %77 : vector<1x32xf32> to vector<8x32xf32>
    %79 = arith.addf %76, %78 : vector<8x32xf32>
    %80 = arith.addf %79, %65 : vector<8x32xf32>
    %c0_37 = arith.constant 0 : index
    %c0_38 = arith.constant 0 : index
    %81 = vector.load %arg9[%c0_37, %c0_38] : memref<1x32xf32, #tpu.memory_space<vmem>>, vector<1x32xf32>
    %c0_39 = arith.constant 0 : index
    %c0_40 = arith.constant 0 : index
    %82 = vector.load %arg10[%c0_39, %c0_40] : memref<1x32xf32, #tpu.memory_space<vmem>>, vector<1x32xf32>
    %cst_41 = arith.constant dense<0.000000e+00> : vector<8xf32>
    %83 = vector.multi_reduction <add>, %80, %cst_41 [1] : vector<8x32xf32> to vector<8xf32>
    %84 = vector.shape_cast %83 : vector<8xf32> to vector<8x1xf32>
    %cst_42 = arith.constant 3.200000e+01 : f32
    %85 = vector.broadcast %cst_42 : f32 to vector<8x1xf32>
    %86 = arith.divf %84, %85 : vector<8x1xf32>
    %87 = vector.broadcast %86 : vector<8x1xf32> to vector<8x32xf32>
    %88 = arith.subf %80, %87 : vector<8x32xf32>
    %89 = arith.mulf %88, %88 : vector<8x32xf32>
    %cst_43 = arith.constant dense<0.000000e+00> : vector<8xf32>
    %90 = vector.multi_reduction <add>, %89, %cst_43 [1] : vector<8x32xf32> to vector<8xf32>
    %91 = vector.shape_cast %90 : vector<8xf32> to vector<8x1xf32>
    %cst_44 = arith.constant 3.200000e+01 : f32
    %92 = vector.broadcast %cst_44 : f32 to vector<8x1xf32>
    %93 = arith.divf %91, %92 : vector<8x1xf32>
    %94 = vector.broadcast %86 : vector<8x1xf32> to vector<8x32xf32>
    %95 = arith.subf %80, %94 : vector<8x32xf32>
    %cst_45 = arith.constant 9.99999974E-6 : f32
    %96 = vector.broadcast %cst_45 : f32 to vector<8x1xf32>
    %97 = arith.addf %93, %96 : vector<8x1xf32>
    %98 = math.rsqrt %97 : vector<8x1xf32>
    %99 = vector.broadcast %98 : vector<8x1xf32> to vector<8x32xf32>
    %100 = arith.mulf %95, %99 : vector<8x32xf32>
    %101 = vector.broadcast %81 : vector<1x32xf32> to vector<8x32xf32>
    %102 = arith.mulf %100, %101 : vector<8x32xf32>
    %103 = vector.broadcast %82 : vector<1x32xf32> to vector<8x32xf32>
    %104 = arith.addf %102, %103 : vector<8x32xf32>
    %c0_46 = arith.constant 0 : index
    %c0_47 = arith.constant 0 : index
    %105 = vector.load %arg11[%c0_46, %c0_47] : memref<8x32xf32, #tpu.memory_space<vmem>>, vector<8x32xf32>
    tpu.vector_store %arg11[%c0_46, %c0_47], %104 {strides = array<i32>} : memref<8x32xf32, #tpu.memory_space<vmem>>, vector<8x32xf32>,
    return
  }
  func.func @transform_0(%arg0: i32) -> (i32, i32, i32) {
    %c0_i32 = arith.constant 0 : i32
    %c0_i32_0 = arith.constant 0 : i32
    %c0_i32_1 = arith.constant 0 : i32
    return %arg0, %c0_i32, %c0_i32_0 : i32, i32, i32
  }
  func.func @transform_1(%arg0: i32) -> (i32, i32) {
    %c0_i32 = arith.constant 0 : i32
    %c0_i32_0 = arith.constant 0 : i32
    %c0_i32_1 = arith.constant 0 : i32
    return %c0_i32, %c0_i32_0 : i32, i32
  }
  func.func @transform_2(%arg0: i32) -> (i32, i32) {
    %c0_i32 = arith.constant 0 : i32
    %c0_i32_0 = arith.constant 0 : i32
    %c0_i32_1 = arith.constant 0 : i32
    return %c0_i32, %c0_i32_0 : i32, i32
  }
  func.func @transform_3(%arg0: i32) -> (i32, i32) {
    %c0_i32 = arith.constant 0 : i32
    %c0_i32_0 = arith.constant 0 : i32
    %c0_i32_1 = arith.constant 0 : i32
    return %c0_i32, %c0_i32_0 : i32, i32
  }
  func.func @transform_4(%arg0: i32) -> (i32, i32) {
    %c0_i32 = arith.constant 0 : i32
    %c0_i32_0 = arith.constant 0 : i32
    %c0_i32_1 = arith.constant 0 : i32
    return %c0_i32, %c0_i32_0 : i32, i32
  }
  func.func @transform_5(%arg0: i32) -> (i32, i32) {
    %c0_i32 = arith.constant 0 : i32
    %c0_i32_0 = arith.constant 0 : i32
    %c0_i32_1 = arith.constant 0 : i32
    return %c0_i32, %c0_i32_0 : i32, i32
  }
  func.func @transform_6(%arg0: i32) -> (i32, i32) {
    %c0_i32 = arith.constant 0 : i32
    %c0_i32_0 = arith.constant 0 : i32
    %c0_i32_1 = arith.constant 0 : i32
    return %c0_i32, %c0_i32_0 : i32, i32
  }
  func.func @transform_7(%arg0: i32) -> (i32, i32) {
    %c0_i32 = arith.constant 0 : i32
    %c0_i32_0 = arith.constant 0 : i32
    %c0_i32_1 = arith.constant 0 : i32
    return %c0_i32, %c0_i32_0 : i32, i32
  }
  func.func @transform_8(%arg0: i32) -> (i32, i32) {
    %c0_i32 = arith.constant 0 : i32
    %c0_i32_0 = arith.constant 0 : i32
    %c0_i32_1 = arith.constant 0 : i32
    return %c0_i32, %c0_i32_0 : i32, i32
  }
  func.func @transform_9(%arg0: i32) -> (i32, i32) {
    %c0_i32 = arith.constant 0 : i32
    %c0_i32_0 = arith.constant 0 : i32
    %c0_i32_1 = arith.constant 0 : i32
    return %c0_i32, %c0_i32_0 : i32, i32
  }
  func.func @transform_10(%arg0: i32) -> (i32, i32) {
    %c0_i32 = arith.constant 0 : i32
    %c0_i32_0 = arith.constant 0 : i32
    return %arg0, %c0_i32 : i32, i32
  }
}

</mosaic_0001>

<bundles_post_ra>
// kernel: tpu_custom_call.1
= control target key start
LH: loop header
LB: loop body
LE: loop exit
PB: predicated region body
PF: predicated region fallthrough
CT: control target
= control target key end

     0   :  { %s1923_s0 = inlined_call_operand.vmem [shape: f32[8,8,8], index: 0, kind: input, shape index: {}]   ;;  %s1924_s1 = inlined_call_operand.hbm [shape: bf16[8,24], index: 1, kind: input, shape index: {}]   ;;  %s1925_s2 = inlined_call_operand.vmem [shape: f32[1,32], index: 2, kind: input, shape index: {}]   ;;  %s1926_s3 = inlined_call_operand.vmem [shape: f32[1,32], index: 3, kind: input, shape index: {}]   ;;  %s1927_s4 = inlined_call_operand.vmem [shape: bf16[32,128], index: 4, kind: input, shape index: {}]   ;;  %s1928_s5 = inlined_call_operand.vmem [shape: f32[1,128], index: 5, kind: input, shape index: {}]   ;;  %s1929_s6 = inlined_call_operand.vmem [shape: bf16[128,32], index: 6, kind: input, shape index: {}]   ;;  %s1930_s7 = inlined_call_operand.vmem [shape: f32[1,32], index: 7, kind: input, shape index: {}]   ;;  %s1931_s8 = inlined_call_operand.vmem [shape: f32[1,32], index: 8, kind: input, shape index: {}]   ;;  %s1932_s9 = inlined_call_operand.vmem [shape: f32[1,32], index: 9, kind: input, shape index: {}]   ;;  %s1933_s10 = inlined_call_operand.hbm [shape: f32[16,32], index: 10, kind: output, shape index: {}]  }
   0x1   :  { %1937 = sst [smem:[#allocation9_spill]] %s1923_s0 }
   0x2   :  { %15 = vsyncpa [#allocation4], 0 }
   0x3   :  { %16 = vsyncpa [#allocation5], 0 }
   0x4   :  { %18 = vsyncpa [#allocation5 + $0x1], 0  ;;  %s1633_s13 = smov 0   ;;  %s1635_s14 = smov 0  }
   0x5   :  { %s1637_s15 = smov 0   ;;  %s1639_s16 = smov 0  }
   0x6 LB: > { %s1654_s17 = sadd.s32 4294967295, %s1567_s16   ;;  %s1232_s18 = sadd.s32 4294967294, %s1567_s16   ;;  %s1567_s16 = sphi %s1639_s16, %s1951_s16   ;;  %s1563_s15 = sphi %s1637_s15, %s1950_s15   ;;  %s1559_s14 = sphi %s1635_s14, %s1949_s14   ;;  %s1555_s13 = sphi %s1633_s13, %s1948_s13  }
   0x7   : > { %s1658_s19 = sadd.s32 1, %s1567_s16   ;;  %s246_s20 = sadd.s32 1, %s1563_s15 }
   0x8   : > { %s243_s21 = ssub.s32 %s1567_s16, %s1658_s19  ;;  %p256_p0 = scmp.ne.s32.totalorder %s1563_s15, %s1559_s14 }
   0x9   : > { %p244_p1 = scmp.eq.s32.totalorder %s243_s21, 0  ;;  %p257_p2 = scmp.eq.s32.totalorder %s1654_s17, 1 }
   0xa   : > { %p262_p3 = scmp.ne.s32.totalorder %s1559_s14, %s1555_s13  ;;  %p263_p4 = scmp.eq.s32.totalorder %s1232_s18, 1 }
   0xb   : > { %s1669_s22 = scalar_select %p244_p1, %s1563_s15, %s246_s20  }
   0xc   : > { %p1671_p5 = por %p257_p2, %p256_p0  ;;  %p1675_p6 = por %p263_p4, %p262_p3 }
   0xd   : > { %p1233_p7 = scmp.ge.s32.totalorder %s1567_s16, 1  ;;  %p270_p8 = scmp.lt.s32.totalorder %s1567_s16, 3 }
   0xe   : > { %s1938_s23 = scalar_select %p1671_p5, 1, 0 }
   0xf   : > { %s1939_s24 = scalar_select %p1675_p6, 1, 0 }
  0x10   : > { %p1934_p9 = scmp.eq.s32.totalorder %s1654_s17, 0  ;;  %p1682_p10 = pnand %p1233_p7, %p270_p8 }
  0x11   : > { %s1569_s26 = smov [#allocation3]   ;;  %s1473_s11 = scalar_lea.hbm %s1924_s1, 64 }
  0x12   : > { %s1940_s25 = scalar_select %p1682_p10, 1, 0 }
  0x13   : > { %s283_s27 = sshll.u32 %s1569_s26, 4  ;;  %p1392_p11 = pneg %p1682_p10  ;;  %s284_s27 = int_to_ptr.vmem [resolvable:$true] %s283_s27 }
  0x14   : > { %p1474_p13 = scmp.ne.s32.totalorder %s1924_s1, %s1473_s11  ;;  %p1480_p3 = scmp.lt.u32.totalorder %s1473_s11, %s1924_s1 }
  0x15   : > { %p1690_p12 = pnand %p1934_p9, %p1392_p11 }
  0x17   : > { %p1475_p0 = pneg %p1690_p12 }
  0x19   : > { %p1476_p1 = pnand %p1475_p0, %p1474_p13 }
  0x1b   : > { %p1477_p2 = pneg %p1476_p1 }
  0x1d   : > { %p1482_p4 = pnand %p1480_p3, %p1477_p2 }
  0x1f   : > { %1485 = shalt.err (!%p1482_p4)
}
  0x20   : > { %s1486_s26 = scalar_lea.vmem %s284_s27, 64  ;;  %p1494_p9 = scmp.lt.s32.totalorder %s284_s27, %s284_s27 }
  0x21   : > { %p1487_p7 = scmp.ne.s32.totalorder %s284_s27, %s1486_s26  ;;  %p1495_p6 = scmp.lt.s32.totalorder %s1486_s26, %s1486_s26 }
  0x23   : > { %p1489_p8 = pnand %p1487_p7, %p1475_p0  ;;  %p1496_p5 = por %p1495_p6, %p1494_p9 }
  0x25   : > { %p1490_p11 = pneg %p1489_p8 }
  0x27   : > { %p1497_p10 = pnand %p1496_p5, %p1490_p11 }
  0x29   : > { %1500 = shalt.err (!%p1497_p10)
}
  0x2a   : > { %1395 = dma.hbm_to_vmem [thread:$0]  (!%p1690_p12), %s1924_s1, 64, %s284_s27, [#allocation4]  }
  0x2b   : > { %p1942_p13 = scmp.ne.s32.totalorder %s1940_s25, 0 }
  0x2c   : > { %p1943_p1 = scmp.eq.s32.totalorder (!%p1942_p13), %s1654_s17, 0 }
  0x2d   : > { %329 = sbr.rel (%p1942_p13) target bundleno = 2399 (0x95f), region = 60 }
  0x34   : > { %1546 = dma.done.wait (%p1943_p1), [#allocation4], 64   ;;  %p1944_p0 = pmov %p1943_p1 }
  0x35   : > { %s1239_s11 = sshll.u32 %s1654_s17, 2  ;;  %vm388_vm0 = vcmask 1043456   ;;  %s1945_s0 = sld [smem:[#allocation9_spill]]  ;;  %v380_v0 = vld [vmem:[#allocation3] sm:$0xf]  ;;  %vm381_vm1 = vcmask 64512  }
  0x36   : > { %1548 = vsyncadd (%p1944_p0), [#allocation4], 4294967232  ;;  %p368_p6 = scmp.lt.s32.totalorder %s1239_s11, 7  ;;  %1385 = vmatprep.subr.msk.bf16.mxu1 %vm388_vm0, %v380_v0  ;;  %v390_v3 = vsel %vm388_vm0, %v380_v0, 0  ;;  %v1570_v8 = vmov 0.0   ;;  %vm1571_vm2 = vmmov 0  }
  0x37   : > { %1304 = vmatpush3.bf16.msra.mxu1 %v390_v3  ;;  %1327 = vmatprep.subr.bf16.mxu0 %v1570_v8  ;;  %s1572_s25 = smov 120   ;;  %s1573_s27 = smov 112   ;;  %vm890_vm3 = vcmask 130112   ;;  %vm896_vm4 = vcmask 195712   ;;  %vm902_vm5 = vcmask 261312   ;;  %vm907_vm6 = vcmask 261120  }
  0x38   : > { %s1953_s11 = smov (!%p368_p6, %s1239_s11), 7  ;;  %1309 = vmatprep.subr.bf16.mxu1 %v1570_v8  ;;  %1329 = vmatprep.mubr.msk.bf16.mxu0 %vm1571_vm2, %v1570_v8  ;;  %s1574_s21 = smov 8  }
  0x39   : > { %s1240_s12 = sshll.u32 %s1953_s11, 3  ;;  %s1575_s26 = smov 24  }
  0x3a   : > { %s1576_s29 = smov 16   ;;  %s1269_s11 = sshll.u32 %s1654_s17, 7 }
  0x3b   : > { %s371_s20 = scalar_lea.vmem %s1945_s0, %s1240_s12  ;;  %s1880_s0 = scalar_lea.hbm %s1933_s10, %s1269_s11 }
  0x3c   : > { %v1720_v1 = vld [vmem:[%s371_s20] sm:$0xff]  ;;  %v1722_v2 = vld [vmem:[%s371_s20 + $0x8] sm:$0xff]  ;;  %v1728_v5 = vld [vmem:[%s371_s20 + $0x10] sm:$0xff]  ;;  %p1946_p9 = scmp.ne.s32.totalorder %s1938_s23, 0  ;;  %s1577_s17 = smov [#allocation6]  }
  0x3d   : > { %v378_v4 = vpack.c.bf16 %v1722_v2, %v1720_v1  ;;  %v1730_v6 = vld [vmem:[%s371_s20 + $0x18] sm:$0xff] }
  0x3e   : > { %v379_v7 = vpack.c.bf16 %v1730_v6, %v1728_v5 }
  0x3f   : > { %1305 = vmatprep.mubr.msk.bf16.mxu1 %vm381_vm1, %v378_v4 }
  0x40   : > { %1306 = vmatmul.mubr.msk.bf16.vlgmr.msra.gmra.mrb[0].mxu1 %vm381_vm1, %v379_v7 }
  0x41   : > { %1311 = vmatprep.mubr.msk.bf16.mxu1 %vm1571_vm2, %v1570_v8 }
 0x113   : > { %v1307_v9 = vpop.f32.mrb[0].mxu1 }
 0x114   : > { %v1742_v10 = vpack.c.bf16 %v1307_v9, %v1307_v9  ;;  %v426_v11 = vpop.f32.mrb[1].mxu1 }
 0x115   : > { %v441_v12 = vpack.c.bf16 %v426_v11, %v426_v11  ;;  %v1308_v13 = vpop.f32.mrb[2].mxu1 }
 0x116   : > { %544 = vrot.lane.b32.xlu1 %v1742_v10, %s1572_s25  ;;  %v429_v14 = vpop.f32.mrb[3].mxu1  ;;  %v1745_v15 = vpack.c.bf16 %v1308_v13, %v1308_v13 }
 0x117   : > { %446 = vrot.lane.b32.xlu0 %v441_v12, %s1572_s25  ;;  %v1747_v16 = vpack.c.bf16 %v429_v14, %v429_v14 }
 0x11a   : > { %593 = vrot.lane.b32.xlu1 %v1745_v15, %s1572_s25 }
 0x11b   : > { %495 = vrot.lane.b32.xlu0 %v1747_v16, %s1572_s25  ;;  %s364_s25 = sand.u32 1, %s1559_s14  }
 0x188   : > { %v545_v17 = vpop.permute.xlu1 %544 }
 0x189   : > { %v447_v18 = vpop.permute.xlu0 %446  ;;  %v550_v24 = vsel %vm381_vm1, %v545_v17, 0 }
 0x18a   : > { %v452_v19 = vsel %vm381_vm1, %v447_v18, 0 }
 0x18b   : > { %1310 = vmatpush3.bf16.xpose.msra.mxu1 %v452_v19 }
 0x18c   : > { %v594_v20 = vpop.permute.xlu1 %593  ;;  %1315 = vmatprep.subr.bf16.mxu1 %v1570_v8 }
 0x18d   : > { %v599_v21 = vsel %vm381_vm1, %v594_v20, 0  ;;  %v496_v22 = vpop.permute.xlu0 %495 }
 0x18e   : > { %1328 = vmatpush3.bf16.xpose.msra.mxu0 %v599_v21  ;;  %v501_v23 = vsel %vm381_vm1, %v496_v22, 0 }
 0x18f   : > { %1339 = vmatprep.subr.bf16.mxu0 %v1570_v8 }
 0x192   : > { %1312 = vmatmul.mubr.msk.bf16.vlgmr.msra.gmra.mrb[4].mxu1 %vm381_vm1, %v441_v12 }
 0x193   : > { %1316 = vmatpush3.bf16.xpose.msra.mxu1 %v501_v23  ;;  %1317 = vmatprep.mubr.msk.bf16.mxu1 %vm1571_vm2, %v1570_v8 }
 0x194   : > { %1321 = vmatprep.subr.bf16.mxu1 %v1570_v8 }
 0x195   : > { %1330 = vmatmul.mubr.msk.bf16.vlgmr.msra.gmra.mrb[0].mxu0 %vm381_vm1, %v1745_v15 }
 0x196   : > { %1341 = vmatprep.mubr.msk.bf16.mxu0 %vm1571_vm2, %v1570_v8 }
 0x19a   : > { %1318 = vmatmul.mubr.msk.bf16.vlgmr.msra.gmra.mrb[8].mxu1 %vm381_vm1, %v1747_v16 }
 0x19b   : > { %1322 = vmatpush3.bf16.xpose.msra.mxu1 %v550_v24  ;;  %1323 = vmatprep.mubr.msk.bf16.mxu1 %vm1571_vm2, %v1570_v8 }
 0x19c   : > { %1333 = vmatprep.subr.bf16.mxu1 %v1570_v8 }
 0x1a2   : > { %1324 = vmatmul.mubr.msk.bf16.vlgmr.msra.gmra.mrb[12].mxu1 %vm381_vm1, %v1742_v10 }
 0x1a3   : > { %1335 = vmatprep.mubr.msk.bf16.mxu1 %vm1571_vm2, %v1570_v8 }
 0x265   : > { %v488_v25 = vpop.f32.mrb[4].mxu1 }
 0x266   : > { %v641_v26 = vmul.f32 0.35355338, %v488_v25  ;;  %v1313_v27 = vpop.f32.mrb[5].mxu1 }
 0x267   : > { %v491_v28 = vpop.f32.mrb[6].mxu1 }
 0x268   : > { %v1314_v29 = vpop.f32.mrb[7].mxu1  ;;  %v635_v30 = vpop.f32.mrb[0].mxu0  ;;  %v645_v31 = vsel %vm381_vm1, %v641_v26, -inf }
 0x269   : > { %v1331_v32 = vpop.f32.mrb[1].mxu0  ;;  %646 = vmax.xlane.f32.xlu0 %v645_v31  ;;  %v644_v45 = vmul.f32 0.35355338, %v635_v30 }
 0x26a   : > { %v638_v33 = vpop.f32.mrb[2].mxu0 }
 0x26b   : > { %v1332_v34 = vpop.f32.mrb[3].mxu0  ;;  %v654_v48 = vsel %vm381_vm1, %v644_v45, -inf }
 0x26d   : > { %v537_v35 = vpop.f32.mrb[8].mxu1 }
 0x26e   : > { %v642_v36 = vmul.f32 0.35355338, %v537_v35  ;;  %v1319_v37 = vpop.f32.mrb[9].mxu1 }
 0x26f   : > { %v540_v38 = vpop.f32.mrb[10].mxu1 }
 0x270   : > { %v1320_v39 = vpop.f32.mrb[11].mxu1  ;;  %v648_v40 = vsel %vm381_vm1, %v642_v36, -inf }
 0x271   : > { %649 = vmax.xlane.f32.xlu1 %v648_v40 }
 0x275   : > { %v586_v41 = vpop.f32.mrb[12].mxu1 }
 0x276   : > { %v643_v42 = vmul.f32 0.35355338, %v586_v41  ;;  %v1325_v43 = vpop.f32.mrb[13].mxu1 }
 0x277   : > { %v589_v44 = vpop.f32.mrb[14].mxu1 }
 0x278   : > { %v1326_v46 = vpop.f32.mrb[15].mxu1  ;;  %v651_v47 = vsel %vm381_vm1, %v643_v42, -inf }
 0x279   : > { %652 = vmax.xlane.f32.xlu0 %v651_v47 }
 0x27d   : > { %655 = vmax.xlane.f32.xlu0 %v654_v48 }
 0x282   : > { %693 = vrot.lane.b32.xlu1 %v441_v12, %s1573_s27 }
 0x2f6   : > { %v647_v49 = vpop.xlane.xlu0 %646 }
 0x2f7   : > { %v657_v50 = vsub.f32 %v641_v26, %v647_v49 }
 0x2f9   : > { %v661_v51 = vmul.f32 1.442695, %v657_v50 }
 0x2fb   : > { %1453 = vpow2.f32 %v661_v51 }
 0x2fe   : > { %v650_v52 = vpop.xlane.xlu1 %649 }
 0x2ff   : > { %v658_v58 = vsub.f32 %v642_v36, %v650_v52 }
 0x301   : > { %v663_v61 = vmul.f32 1.442695, %v658_v58 }
 0x302   : > { %v694_v53 = vpop.permute.xlu1 %693 }
 0x303   : > { %v699_v54 = vsel %vm388_vm0, %v694_v53, 0 }
 0x304   : > { %1334 = vmatpush3.bf16.msra.mxu1 %v699_v54 }
 0x305   : > { %v1454_v55 = vpop.eup %1453  ;;  %1345 = vmatprep.subr.bf16.mxu1 %v1570_v8 }
 0x306   : > { %v653_v56 = vpop.xlane.xlu0 %652  ;;  %v669_v57 = vsel %vm381_vm1, %v1454_v55, 0.0 }
 0x307   : > { %670 = vadd.xlane.f32.xlu1 %v669_v57  ;;  %v659_v7 = vsub.f32 %v643_v42, %v653_v56 }
 0x309   : > { %v665_v9 = vmul.f32 1.442695, %v659_v7  ;;  %v1450_v7 = vld [vmem:[%s1929_s6 + $0x28] sm:$0xff]  }
 0x30a   : > { %v656_v59 = vpop.xlane.xlu0 %655 }
 0x30b   : > { %v660_v60 = vsub.f32 %v644_v45, %v656_v59 }
 0x30d   : > { %v667_v62 = vmul.f32 1.442695, %v660_v60  ;;  %v1443_v60 = vld [vmem:[%s1927_s4] sm:$0xff]  }
 0x30f   : > { %1455 = vpow2.f32 %v667_v62  ;;  %v1445_v62 = vld [vmem:[%s1929_s6] sm:$0xff]  }
 0x310   : > { %1457 = vpow2.f32 %v663_v61  ;;  %v1444_v61 = vld [vmem:[%s1927_s4 + $0x8] sm:$0xff]  }
 0x311   : > { %1459 = vpow2.f32 %v665_v9 }
 0x318   : > { %789 = vrot.lane.b32.xlu1 %v1742_v10, %s1573_s27 }
 0x319   : > { %v1456_v63 = vpop.eup %1455 }
 0x31a   : > { %v678_v0 = vsel %vm381_vm1, %v1456_v63, 0.0  ;;  %v1458_v3 = vpop.eup %1457 }
 0x31b   : > { %679 = vadd.xlane.f32.xlu0 %v678_v0  ;;  %v672_v4 = vsel %vm381_vm1, %v1458_v3, 0.0  ;;  %v1460_v11 = vpop.eup %1459  ;;  %v1447_v0 = vld [vmem:[%s1929_s6 + $0x10] sm:$0xff]  }
 0x31c   : > { %v675_v12 = vsel %vm381_vm1, %v1460_v11, 0.0 }
 0x31f   : > { %673 = vadd.xlane.f32.xlu0 %v672_v4  ;;  %v1449_v4 = vld [vmem:[%s1929_s6 + $0x20] sm:$0xff]  }
 0x335   : > { %741 = vrot.lane.b32.xlu0 %v1747_v16, %s1573_s27 }
 0x33c   : > { %676 = vadd.xlane.f32.xlu1 %v675_v12 }
 0x34d   : > { %837 = vrot.lane.b32.xlu1 %v1745_v15, %s1573_s27  ;;  %s1238_s27 = sshll.u32 %s364_s25, 3 }
 0x34e   : > { %s366_s12 = scalar_lea.vmem [#allocation6], %s1238_s27  ;;  %s1505_s27 = sshll.u32 %s1577_s17, 4  ;;  %s1506_s27 = int_to_ptr.vmem [resolvable:$false] %s1505_s27 }
 0x34f   : > { %s1161_s28 = sshll.u32 %s366_s12, 4  ;;  %s1882_s28 = int_to_ptr.vmem [resolvable:$true] %s1161_s28 }
 0x350   : > { %p1508_p2 = scmp.lt.s32.totalorder %s1882_s28, %s1506_s27 }
 0x394   : > { %v671_v10 = vpop.xlane.xlu1 %670 }
 0x395   : > { %1461 = vrcp.f32 %v671_v10 }
 0x398   : > { %v790_v17 = vpop.permute.xlu1 %789 }
 0x399   : > { %v795_v19 = vsel %vm388_vm0, %v790_v17, 0  ;;  %v1252_v17 = vld [vmem:[%s1926_s3] ss:$0 sm:$0xff] }
 0x39f   : > { %v1462_v13 = vpop.eup %1461 }
 0x3a0   : > { %v682_v14 = vmul.f32 %v1462_v13, %v1454_v55  ;;  %v1251_v13 = vld [vmem:[%s1925_s2] ss:$0 sm:$0xff] }
 0x3a2   : > { %v689_v18 = vpack.c.bf16 %v682_v14, %v682_v14 }
 0x3a4   : > { %1336 = vmatmul.mubr.msk.bf16.vlgmr.msra.gmra.mrb[16].mxu1 %vm381_vm1, %v689_v18 }
 0x3a5   : > { %1346 = vmatpush3.bf16.msra.mxu1 %v795_v19  ;;  %1347 = vmatprep.mubr.msk.bf16.mxu1 %vm1571_vm2, %v1570_v8 }
 0x3a6   : > { %1357 = vmatprep.subr.bf16.mxu1 %v1570_v8 }
 0x3a8   : > { %v680_v16 = vpop.xlane.xlu0 %679 }
 0x3ac   : > { %v674_v20 = vpop.xlane.xlu0 %673 }
 0x3ad   : > { %1463 = vrcp.f32 %v674_v20  ;;  %v1451_v20 = vld [vmem:[%s1929_s6 + $0x30] sm:$0xff]  }
 0x3ae   : > { %1465 = vrcp.f32 %v680_v16 }
 0x3b0   : > { %v742_v15 = vpop.permute.xlu0 %741 }
 0x3b1   : > { %v747_v21 = vsel %vm388_vm0, %v742_v15, 0  ;;  %v1452_v15 = vld [vmem:[%s1929_s6 + $0x38] sm:$0xff]  }
 0x3b2   : > { %1340 = vmatpush3.bf16.msra.mxu0 %v747_v21  ;;  %v1253_v21 = vld [vmem:[%s1928_s5] ss:$0 sm:$0xff] }
 0x3b3   : > { %1351 = vmatprep.subr.bf16.mxu0 %v1570_v8 }
 0x3b7   : > { %v1464_v22 = vpop.eup %1463 }
 0x3b8   : > { %v684_v23 = vmul.f32 %v1464_v22, %v1458_v3  ;;  %v1466_v25 = vpop.eup %1465  ;;  %v1448_v3 = vld [vmem:[%s1929_s6 + $0x18] sm:$0xff]  }
 0x3b9   : > { %v688_v27 = vmul.f32 %v1466_v25, %v1456_v63  ;;  %v1446_v63 = vld [vmem:[%s1929_s6 + $0x8] sm:$0xff]  }
 0x3ba   : > { %v690_v24 = vpack.c.bf16 %v684_v23, %v684_v23 }
 0x3bb   : > { %v692_v30 = vpack.c.bf16 %v688_v27, %v688_v27 }
 0x3bc   : > { %1342 = vmatmul.mubr.msk.bf16.vlgmr.msra.gmra.mrb[4].mxu0 %vm381_vm1, %v690_v24 }
 0x3bd   : > { %1353 = vmatprep.mubr.msk.bf16.mxu0 %vm1571_vm2, %v1570_v8 }
 0x3c9   : > { %v677_v26 = vpop.xlane.xlu1 %676 }
 0x3ca   : > { %1467 = vrcp.f32 %v677_v26 }
 0x3cd   : > { %v838_v28 = vpop.permute.xlu1 %837 }
 0x3ce   : > { %v843_v29 = vsel %vm388_vm0, %v838_v28, 0 }
 0x3cf   : > { %1352 = vmatpush3.bf16.msra.mxu0 %v843_v29 }
 0x3d0   : > { %1365 = vmatprep.subr.bf16.mxu0 %v1570_v8 }
 0x3d2   : > { %1354 = vmatmul.mubr.msk.bf16.vlgmr.msra.gmra.mrb[8].mxu0 %vm381_vm1, %v692_v30 }
 0x3d3   : > { %1381 = vmatprep.mubr.msk.bf16.mxu0 %vm1571_vm2, %v1570_v8  ;;  %1366 = vmatpush3.bf16.msra.mxu0 %v1445_v62 }
 0x3d4   : > { %v1468_v31 = vpop.eup %1467  ;;  %1367 = vmatprep.subr.bf16.mxu0 %v1570_v8 }
 0x3d5   : > { %v686_v32 = vmul.f32 %v1468_v31, %v1460_v11 }
 0x3d7   : > { %v691_v33 = vpack.c.bf16 %v686_v32, %v686_v32  ;;  %1368 = vmatpush3.bf16.msra.mxu0 %v1446_v63 }
 0x3d8   : > { %1369 = vmatprep.subr.bf16.mxu0 %v1570_v8 }
 0x3d9   : > { %1348 = vmatmul.mubr.msk.bf16.vlgmr.msra.gmra.mrb[20].mxu1 %vm381_vm1, %v691_v33 }
 0x3da   : > { %1361 = vmatprep.mubr.msk.bf16.mxu1 %vm1571_vm2, %v1570_v8  ;;  %1358 = vmatpush3.bf16.msra.mxu1 %v1443_v60 }
 0x3db   : > { %1359 = vmatprep.subr.bf16.mxu1 %v1570_v8  ;;  %1370 = vmatpush3.bf16.msra.mxu0 %v1447_v0 }
 0x3dc   : > { %1371 = vmatprep.subr.bf16.mxu0 %v1570_v8 }
 0x3de   : > { %1360 = vmatpush3.bf16.msra.mxu1 %v1444_v61 }
 0x3df   : > { %1372 = vmatpush3.bf16.msra.mxu0 %v1448_v3 }
 0x3e0   : > { %1373 = vmatprep.subr.bf16.mxu0 %v1570_v8 }
 0x3e3   : > { %1374 = vmatpush3.bf16.msra.mxu0 %v1449_v4 }
 0x3e4   : > { %1375 = vmatprep.subr.bf16.mxu0 %v1570_v8 }
 0x3e7   : > { %1376 = vmatpush3.bf16.msra.mxu0 %v1450_v7 }
 0x3e8   : > { %1377 = vmatprep.subr.bf16.mxu0 %v1570_v8 }
 0x3eb   : > { %1378 = vmatpush3.bf16.msra.mxu0 %v1451_v20 }
 0x3ec   : > { %1379 = vmatprep.subr.bf16.mxu0 %v1570_v8  ;;  %v1257_v8 = vld [vmem:[%s1930_s7] ss:$0 sm:$0xff] }
 0x3ef   : > { %1380 = vmatpush3.bf16.msra.mxu0 %v1452_v15 }
 0x477   : > { %v735_v34 = vpop.f32.mrb[16].mxu1 }
 0x478   : > { %v736_v35 = vadd.f32 %v735_v34, %v1720_v1  ;;  %v1337_v36 = vpop.f32.mrb[17].mxu1 }
 0x479   : > { %v738_v37 = vpop.f32.mrb[18].mxu1 }
 0x47a   : > { %885 = vst.msk [vmem:[#allocation2] sm:$0xff] %vm381_vm1, %v736_v35  ;;  %v1338_v38 = vpop.f32.mrb[19].mxu1 }
 0x48f   : > { %v783_v39 = vpop.f32.mrb[4].mxu0 }
 0x490   : > { %v784_v40 = vadd.f32 %v783_v39, %v1722_v2  ;;  %v1343_v41 = vpop.f32.mrb[5].mxu0 }
 0x491   : > { %v786_v42 = vpop.f32.mrb[6].mxu0 }
 0x492   : > { %887 = vrot.lane.b32.xlu0 %v784_v40, %s1574_s21  ;;  %v1344_v43 = vpop.f32.mrb[7].mxu0  ;;  %s1148_s21 = scalar_lea.sflag [#allocation5], %s364_s25 }
 0x4a5   : > { %v879_v44 = vpop.f32.mrb[8].mxu0 }
 0x4a6   : > { %v880_v45 = vadd.f32 %v879_v44, %v1730_v6  ;;  %v1355_v46 = vpop.f32.mrb[9].mxu0 }
 0x4a7   : > { %v882_v47 = vpop.f32.mrb[10].mxu0 }
 0x4a8   : > { %899 = vrot.lane.b32.xlu0 %v880_v45, %s1575_s26  ;;  %v1356_v1 = vpop.f32.mrb[11].mxu0  ;;  %v1266_v45 = vld [vmem:[%s1931_s8] ss:$0 sm:$0xff]  ;;  %s1501_s26 = scalar_lea.vmem %s1882_s28, 128 }
 0x4a9   : > { %v1267_v47 = vld [vmem:[%s1932_s9] ss:$0 sm:$0xff]  ;;  %p1502_p5 = scmp.ne.s32.totalorder %s1882_s28, %s1501_s26 }
 0x4ab   : > { %p1503_p10 = pnand %p1502_p5, %p1946_p9 }
 0x4ac   : > { %v831_v48 = vpop.f32.mrb[20].mxu1 }
 0x4ad   : > { %v832_v49 = vadd.f32 %v831_v48, %v1728_v5  ;;  %v1349_v50 = vpop.f32.mrb[21].mxu1  ;;  %p1504_p12 = pneg %p1503_p10 }
 0x4ae   : > { %v834_v51 = vpop.f32.mrb[22].mxu1 }
 0x4af   : > { %893 = vrot.lane.b32.xlu1 %v832_v49, %s1576_s29  ;;  %v1350_v2 = vpop.f32.mrb[23].mxu1  ;;  %s1507_s29 = scalar_lea.vmem %s1506_s27, 256 }
 0x4b0   : > { %p1509_p3 = scmp.lt.s32.totalorder %s1507_s29, %s1501_s26 }
 0x4b2   : > { %p1510_p4 = por %p1509_p3, %p1508_p2 }
 0x4b4   : > { %p1511_p7 = pnand %p1510_p4, %p1504_p12 }
 0x504   : > { %v888_v52 = vpop.permute.xlu0 %887 }
 0x505   : > { %891 = vst.msk [vmem:[#allocation2] sm:$0xff] %vm890_vm3, %v888_v52 }
 0x51a   : > { %v900_v6 = vpop.permute.xlu0 %899 }
 0x521   : > { %v894_v53 = vpop.permute.xlu1 %893 }
 0x522   : > { %897 = vst.msk [vmem:[#allocation2] sm:$0xff] %vm896_vm4, %v894_v53 }
 0x523   : > { %903 = vst.msk [vmem:[#allocation2] sm:$0xff] %vm902_vm5, %v900_v6 }
 0x52a   : > { %v904_v54 = vld [vmem:[#allocation2] sm:$0xff] }
 0x52b   : > { %v908_v55 = vsel %vm907_vm6, %v904_v54, 0.0 }
 0x52c   : > { %909 = vadd.xlane.f32.xlu1 %v908_v55 }
 0x5b9   : > { %v910_v5 = vpop.xlane.xlu1 %909 }
 0x5ba   : > { %v912_v56 = vmul.f32 0.03125, %v910_v5 }
 0x5bc   : > { %v913_v57 = vsub.f32 %v904_v54, %v912_v56 }
 0x5be   : > { %v914_v58 = vmul.f32 %v913_v57, %v913_v57 }
 0x5c0   : > { %v915_v59 = vsel %vm907_vm6, %v914_v58, 0.0 }
 0x5c1   : > { %916 = vadd.xlane.f32.xlu0 %v915_v59 }
 0x64e   : > { %v917_v9 = vpop.xlane.xlu0 %916 }
 0x64f   : > { %v918_v11 = vmul.f32 0.03125, %v917_v9 }
 0x651   : > { %v919_v12 = vadd.f32 1e-05, %v918_v11 }
 0x653   : > { %1469 = vrsqrt.f32 %v919_v12 }
 0x65d   : > { %v1470_v10 = vpop.eup %1469 }
 0x65e   : > { %v921_v14 = vmul.f32 %v1470_v10, %v913_v57 }
 0x660   : > { %v928_v18 = vmul.f32 %v1251_v13, %v921_v14 }
 0x662   : > { %v935_v19 = vadd.f32 %v1252_v17, %v928_v18 }
 0x664   : > { %v936_v16 = vpack.c.bf16 %v935_v19, %v935_v19 }
 0x666   : > { %1362 = vmatmul.mubr.msk.bf16.vlgmr.msra.gmra.mrb[24].mxu1 %vm907_vm6, %v936_v16 }
 0x739   : > { %v997_v22 = vpop.f32.mrb[24].mxu1 }
 0x73a   : > { %v998_v23 = vadd.f32 %v1253_v21, %v997_v22  ;;  %v1363_v24 = vpop.f32.mrb[25].mxu1 }
 0x73b   : > { %v1000_v25 = vpop.f32.mrb[26].mxu1 }
 0x73c   : > { %v1003_v26 = vmax.f32 %v998_v23, 0.0  ;;  %v1364_v27 = vpop.f32.mrb[27].mxu1 }
 0x73e   : > { %v1004_v28 = vpack.c.bf16 %v1003_v26, %v1003_v26 }
 0x740   : > { %1382 = vmatmul.mubr.bf16.vlgmr.msra.gmra.mrb[12].mxu0 %v1004_v28 }
 0x813   : > { %v1110_v29 = vpop.f32.mrb[12].mxu0 }
 0x814   : > { %v1111_v30 = vadd.f32 %v1257_v8, %v1110_v29  ;;  %v1383_v31 = vpop.f32.mrb[13].mxu0 }
 0x815   : > { %v1113_v32 = vpop.f32.mrb[14].mxu0 }
 0x816   : > { %v1384_v33 = vpop.f32.mrb[15].mxu0  ;;  %v1116_v34 = vadd.f32 %v1111_v30, %v935_v19 }
 0x818   : > { %v1119_v35 = vsel %vm907_vm6, %v1116_v34, 0.0 }
 0x819   : > { %1120 = vadd.xlane.f32.xlu0 %v1119_v35 }
 0x8a6   : > { %v1121_v36 = vpop.xlane.xlu0 %1120 }
 0x8a7   : > { %v1122_v37 = vmul.f32 0.03125, %v1121_v36 }
 0x8a9   : > { %v1123_v38 = vsub.f32 %v1116_v34, %v1122_v37 }
 0x8ab   : > { %v1124_v39 = vmul.f32 %v1123_v38, %v1123_v38 }
 0x8ad   : > { %v1125_v40 = vsel %vm907_vm6, %v1124_v39, 0.0 }
 0x8ae   : > { %1126 = vadd.xlane.f32.xlu1 %v1125_v40 }
 0x93b   : > { %v1127_v41 = vpop.xlane.xlu1 %1126 }
 0x93c   : > { %v1128_v42 = vmul.f32 0.03125, %v1127_v41 }
 0x93e   : > { %v1129_v43 = vadd.f32 1e-05, %v1128_v42 }
 0x940   : > { %1471 = vrsqrt.f32 %v1129_v43 }
 0x94a   : > { %v1472_v44 = vpop.eup %1471 }
 0x94b   : > { %v1131_v46 = vmul.f32 %v1472_v44, %v1123_v38 }
 0x94d   : > { %v1138_v1 = vmul.f32 %v1266_v45, %v1131_v46 }
 0x94f   : > { %v1145_v48 = vadd.f32 %v1267_v47, %v1138_v1 }
 0x951   : > { %1146 = vst.msk [vmem:[%s366_s12] sm:$0xff] %vm907_vm6, %v1145_v48 }
 0x952   : > { %1514 = shalt.err (!%p1511_p7)
}
 0x953   : > { %s1515_s25 = scalar_lea.hbm %s1880_s0, 128  ;;  %s1519_s12 = scalar_lea.hbm %s1933_s10, 256 }
 0x954   : > { %p1516_p8 = scmp.ne.s32.totalorder %s1880_s0, %s1515_s25  ;;  %p1520_p1 = scmp.lt.u32.totalorder %s1880_s0, %s1933_s10 }
 0x955   : > { %p1521_p0 = scmp.lt.u32.totalorder %s1519_s12, %s1515_s25  ;;  %p1523_p5 = scmp.lt.u32.totalorder %s1515_s25, %s1880_s0 }
 0x956   : > { %p1517_p11 = pnand %p1516_p8, %p1946_p9 }
 0x957   : > { %p1522_p6 = por %p1521_p0, %p1520_p1 }
 0x958   : > { %p1518_p13 = pneg %p1517_p11 }
 0x959   : > { %p1524_p10 = por %p1523_p5, %p1522_p6 }
 0x95b   : > { %p1525_p12 = pnand %p1524_p10, %p1518_p13 }
 0x95d   : > { %1528 = shalt.err (!%p1525_p12)
}
 0x95e   : > { %1390 = dma.vmem_to_hbm [thread:$0]  (%p1946_p9), %s1882_s28, 128, %s1880_s0, %s1148_s21  }
 0x95f PF: > { %p1402_p2 = scmp.ge.s32.totalorder %s1567_s16, 2  ;;  %s1173_s26 = sand.u32 1, %s1555_s13  }
 0x960   : > { %p1947_p3 = scmp.ne.s32.totalorder %s1939_s24, 0  ;;  %s1174_s17 = scalar_lea.sflag [#allocation5], %s1173_s26 }
 0x962   : > { %p1397_p4 = pnand %p1402_p2, %p1947_p3 }
 0x964   : > { %1550 = dma.done.wait (!%p1397_p4), %s1174_s17, 128  }
 0x965   : > { %1552 = vsyncadd (!%p1397_p4), %s1174_s17, 4294967168  ;;  %p21_p7 = scmp.ge.s32.totalorder %s1658_s19, 4   ;;  %s1948_s13 = smov %s1559_s14 }
 0x966   : > { %s1949_s14 = smov %s1563_s15  ;;  %s1950_s15 = smov %s1669_s22 }
 0x967   : > { %s1951_s16 = smov %s1658_s19  ;;  %23 = sbr.rel (!%p21_p7) target bundleno = 6 (0x6), region = 100 }
 0x96e   :  { %1179 = vsyncpa [#allocation4], 1 }
 0x96f   :  { %1181 = vsyncpa [#allocation4 + $0x1], 1 }
 0x970   :  { %1182 = vsyncpa [#allocation5], 1 }
 0x971   :  { %1184 = vsyncpa [#allocation5 + $0x1], 1 }

</bundles_post_ra>
